<compile_context>
chip_gen: v7x
topology: tpu7x:2x2x1
jax: 0.10.0
libtpu: 0.0.40
codegen_flags: <defaults>
</compile_context>

<pallas_src>
import functools

import jax
import jax.numpy as jnp
import numpy as np
from jax.experimental import pallas as pl
from jax.experimental.pallas import tpu as pltpu


# ----------------------------- Pallas kernel -------------------------------
def _pool_linear_kernel(x_ref, w_ref, b_ref, o_ref, acc_ref, *, S, ts, lw, need_mask):
    """Global-avg-pool over the lane (spatial) axis + 1x1 conv + bias.

    x_ref:   (nt, C, ts)      current (batch-block, spatial-chunk), spatial on lanes
    w_ref:   (C, C2)          1x1 conv weight (native dtype)
    b_ref:   (1, C2)          conv bias (native dtype)
    o_ref:   (nt, C2)         output block (written on the last spatial step)
    acc_ref: (nt, C, lw) f32  running lane-parallel spatial sum (lw = 128 or S)
    """
    s = pl.program_id(1)
    ns = pl.num_programs(1)
    n_sub = ts // lw

    @pl.when(s == 0)
    def _init():
        acc_ref[...] = jnp.zeros_like(acc_ref)

    xb = x_ref[...].astype(jnp.float32)                         # (nt, C, ts)

    def partial_sum(masked):
        # Lane-tile-aligned static slices -> pure VPU adds in the hot loop;
        # no per-step cross-lane (XLU) reduce and a single acc RMW per step.
        part = None
        for j in range(n_sub):
            chunk = xb[:, :, j * lw:(j + 1) * lw]
            if masked:
                lane = jax.lax.broadcasted_iota(jnp.int32, chunk.shape, 2)
                chunk = jnp.where(s * ts + j * lw + lane < S, chunk, 0.0)
            part = chunk if part is None else part + chunk
        return part

    if need_mask:  # static: only emitted when S % ts != 0
        @pl.when(s < ns - 1)
        def _steady():
            acc_ref[...] += partial_sum(False)

        @pl.when(s == ns - 1)
        def _tail():
            acc_ref[...] += partial_sum(True)
    else:
        acc_ref[...] += partial_sum(False)

    @pl.when(s == ns - 1)
    def _finish():
        pooled = jnp.sum(acc_ref[...], axis=2) * (1.0 / S)      # (nt, C) mean over H*W
        y = jnp.dot(pooled.astype(w_ref.dtype), w_ref[...],
                    preferred_element_type=jnp.float32)
        o_ref[...] = (y + b_ref[...].astype(jnp.float32)).astype(o_ref.dtype)


# --------------------------- tiling / VMEM budget ---------------------------
def _vmem_limit_bytes():
    """Per-generation VMEM limit: ~3/4 of physical (v7x 64 MiB -> 48 MiB,
    v5e/v6e 128 MiB -> 96 MiB).  Falls back to a v7x-safe 48 MiB."""
    phys = 64 << 20
    try:
        info = pltpu.get_tpu_info()
        v = getattr(info, "vmem_capacity_bytes", None)
        if v:
            phys = int(v)
    except Exception:
        pass
    return min(int(phys * 3 // 4), 100 << 20)


def _round_up(v, m):
    return ((v + m - 1) // m) * m


def _est_vmem_bytes(nt, C, ts, C2, x_isz, w_isz):
    """Rough padded-VMEM footprint of one pallas_call config."""
    c_pad, c2_pad = _round_up(C, 8), _round_up(C2, 128)
    x_bytes = 2 * nt * c_pad * _round_up(ts, 128) * x_isz       # double-buffered input
    w_bytes = 2 * c_pad * c2_pad * w_isz                        # conservative (2 bufs)
    b_bytes = 2 * 8 * c2_pad * 4
    acc_bytes = nt * c_pad * 128 * 4
    out_bytes = 2 * _round_up(nt, 8) * c2_pad * 4
    return x_bytes + w_bytes + b_bytes + acc_bytes + out_bytes


def _pick_tiles(N, C, S, C2, x_isz, w_isz, budget):
    """Pick (nt, ts): largest lane-dense spatial tile that fits the budget,
    blocking the batch axis when even ts=128 does not fit.  nt must be == N or
    a multiple of 8 (sublane rule on the (nt, C2) output block)."""
    if S <= 128:
        ts_opts = [S]
    else:
        top = min((S // 128) * 128, 2048)
        ts_opts = [t for t in (2048, 1024, 512, 256, 128) if t <= top] or [128]
    nt_opts = [N] + [m for m in (512, 256, 128, 64, 32, 16, 8) if m < N]
    for ts in ts_opts:
        for nt in nt_opts:
            if _est_vmem_bytes(nt, C, ts, C2, x_isz, w_isz) <= budget:
                if nt == N and N > 8:
                    # Split the batch into >= 2 blocks so the "parallel" grid
                    # axis can shard across v7x's 2 TensorCores (same bytes).
                    half = _round_up((N + 1) // 2, 8)
                    if half < N:
                        nt = half
                return nt, ts
    return (N if N <= 8 else 8), ts_opts[-1]


# ------------------------------- fused call ---------------------------------
def _pool_linear(x3d, w2d, bias):
    """Fused AdaptiveAvgPool2d(1) + 1x1 Conv (+bias) for one input tensor.

    x3d:  (N, C, S)  activations (NCHW with spatial flattened, any float dtype)
    w2d:  (C, C2)    conv weight, native dtype
    bias: (C2,)      conv bias (pass zeros when folding several list inputs)
    Returns a float32 (N, C2) partial result.
    """
    N, C, S = x3d.shape
    C2 = w2d.shape[1]

    limit = _vmem_limit_bytes()
    nt, ts = _pick_tiles(N, C, S, C2, x3d.dtype.itemsize, w2d.dtype.itemsize,
                         budget=int(limit * 0.85))
    grid = (pl.cdiv(N, nt), pl.cdiv(S, ts))
    need_mask = (S % ts) != 0
    lw = 128 if ts % 128 == 0 else ts               # accumulator lane width

    kernel = functools.partial(_pool_linear_kernel, S=S, ts=ts, lw=lw,
                               need_mask=need_mask)
    bias2d = bias.reshape(1, C2)

    def call(single_buffer_consts):
        const_kw = {}
        if single_buffer_consts:
            # Constant-index operands: no point double-buffering them.
            const_kw = dict(pipeline_mode=pl.Buffered(1))
        return pl.pallas_call(
            kernel,
            out_shape=jax.ShapeDtypeStruct((N, C2), jnp.float32),
            grid=grid,
            in_specs=[
                pl.BlockSpec((nt, C, ts), lambda n, s: (n, 0, s)),
                pl.BlockSpec((C, C2), lambda n, s: (0, 0), **const_kw),
                pl.BlockSpec((1, C2), lambda n, s: (0, 0), **const_kw),
            ],
            out_specs=pl.BlockSpec((nt, C2), lambda n, s: (n, 0)),
            scratch_shapes=[pltpu.VMEM((nt, C, lw), jnp.float32)],
            compiler_params=pltpu.CompilerParams(
                dimension_semantics=("parallel", "arbitrary"),
                vmem_limit_bytes=limit),
        )(x3d, w2d, bias2d)

    try:
        return call(True)
    except Exception:
        # Fallback for jax builds that reject pipeline_mode=pl.Buffered(1).
        return call(False)


# ------------------------------ module wrapper ------------------------------
def classify_forward(x, w, b):
    """Classify.forward.

    x: (N, C1, H, W) array, or a list of such arrays (channel counts / spatial
       sizes may differ) -- matches torch.cat([aap(y) for y in x], 1).
    w: (C2, C1_total, 1, 1) Conv2d weight (k=1, s=1, p=0, groups=1 defaults).
    b: (C2,) Conv2d bias.
    returns: (N, C2)  (Flatten of the (N, C2, 1, 1) conv output), in the natural
             result dtype of (x, w).
    """
    xs = list(x) if isinstance(x, (list, tuple)) else [x]
    C2 = w.shape[0]
    assert w.ndim == 4 and w.shape[2] == 1 and w.shape[3] == 1, "k=1 expected"
    # TODO(synk): k>1 / groups>1 / stride / padding Conv2d variants of Classify
    # are not implemented (module defaults are k=1, s=1, p=0, g=1).
    w2d = w.reshape(C2, -1).T                       # (C1_total, C2), native dtype

    out_dtype = jnp.result_type(xs[0].dtype, w.dtype)
    zeros_b = jnp.zeros_like(b)
    out = None
    off = 0
    for i, xi in enumerate(xs):
        N, Ci, H, W_ = xi.shape
        wi = w2d[off:off + Ci]                      # this tensor's Cin slice
        bi = b if i == 0 else zeros_b               # add bias exactly once
        yi = _pool_linear(xi.reshape(N, Ci, H * W_), wi, bi)   # f32 partial
        out = yi if out is None else out + yi       # == conv(cat(pooled_i)) + b
        off += Ci
    # TODO(synk): for v7x inference batches that fit a single N-block (N<=8),
    # a channel-parallel grid split (tiny partials summed in JAX) would keep
    # both TensorCores streaming; not implemented here.
    return out.astype(out_dtype)


# ------------------------------ pure-JAX ref --------------------------------
def ref_classify(x, w, b):
    xs = list(x) if isinstance(x, (list, tuple)) else [x]
    pooled = jnp.concatenate(
        [jnp.mean(xi.astype(jnp.float32), axis=(2, 3)) for xi in xs], axis=1)
    w2d = w.reshape(w.shape[0], -1)                 # (C2, C1_total), k=1
    return pooled @ w2d.T.astype(jnp.float32) + b.astype(jnp.float32)


# ----------------------------------- main -----------------------------------
if __name__ == "__main__":
    key = jax.random.PRNGKey(0)
    k1, k2, kw, kb = jax.random.split(key, 4)

    # --- test 1: single tensor, Classify(c1=4, c2=4) -------------------------
    N, C1, C2, H, W = 2, 4, 4, 16, 16
    x = jax.random.normal(k1, (N, C1, H, W), jnp.float32)          # NCHW like PyTorch
    w = jax.random.normal(kw, (C2, C1, 1, 1), jnp.float32) / np.sqrt(C1)
    b = jax.random.normal(kb, (C2,), jnp.float32) * 0.1

    out = jax.block_until_ready(classify_forward(x, w, b))
    ref = jax.block_until_ready(ref_classify(x, w, b))
    assert out.shape == (N, C2), out.shape
    np.testing.assert_allclose(np.asarray(out), np.asarray(ref),
                               rtol=2e-5, atol=2e-5)

    # --- test 2: list input + ragged spatial tail (masked last block) --------
    xa = jax.random.normal(k1, (N, 4, 16, 16), jnp.float32)
    xb = jax.random.normal(k2, (N, 6, 13, 13), jnp.float32)        # S=169 -> 2 blocks, masked tail
    C1t, C2b = 4 + 6, 5
    wl = jax.random.normal(kw, (C2b, C1t, 1, 1), jnp.float32) / np.sqrt(C1t)
    bl = jax.random.normal(kb, (C2b,), jnp.float32) * 0.1

    out2 = jax.block_until_ready(classify_forward([xa, xb], wl, bl))
    ref2 = jax.block_until_ready(ref_classify([xa, xb], wl, bl))
    assert out2.shape == (N, C2b), out2.shape
    np.testing.assert_allclose(np.asarray(out2), np.asarray(ref2),
                               rtol=2e-5, atol=2e-5)

    # --- test 3: bf16 activations/weights + batch-blocked parallel grid axis -
    N3, C13, C23, H3, W3 = 16, 32, 8, 8, 8
    x3 = jax.random.normal(k1, (N3, C13, H3, W3), jnp.bfloat16)
    w3 = (jax.random.normal(kw, (C23, C13, 1, 1), jnp.float32)
          / np.sqrt(C13)).astype(jnp.bfloat16)
    b3 = (jax.random.normal(kb, (C23,), jnp.float32) * 0.1).astype(jnp.bfloat16)

    out3 = jax.block_until_ready(classify_forward(x3, w3, b3))
    ref3 = jax.block_until_ready(ref_classify(x3, w3, b3))
    assert out3.shape == (N3, C23) and out3.dtype == jnp.bfloat16, (out3.shape, out3.dtype)
    np.testing.assert_allclose(np.asarray(out3, dtype=np.float32), np.asarray(ref3),
                               rtol=5e-2, atol=2e-2)

    print("KERNEL_OK")
</pallas_src>

<mosaic_0001>
module attributes {stable_mosaic.version = 11 : i64} {
  func.func @_pool_linear_kernel(%arg0: i32, %arg1: i32, %arg2: memref<2x4x256xf32, #tpu.memory_space<vmem>>, %arg3: memref<4x4xf32, #tpu.memory_space<vmem>>, %arg4: memref<1x4xf32, #tpu.memory_space<vmem>>, %arg5: memref<2x4xf32, #tpu.memory_space<vmem>>, %arg6: memref<2x4x128xf32, #tpu.memory_space<vmem>>) attributes {dimension_semantics = [#tpu.dimension_semantics<parallel>, #tpu.dimension_semantics<arbitrary>], iteration_bounds = array<i64: 1, 1>, scalar_prefetch = 0 : i64, scratch_operands = 1 : i64, tpu.core_type = #tpu.core_type<tc>, window_params = [{transform_indices = @transform_0, window_bounds = array<i64: 2, 4, 256>}, {pipeline_mode = #tpu.pipeline_mode<synchronous>, transform_indices = @transform_1, window_bounds = array<i64: 4, 4>}, {pipeline_mode = #tpu.pipeline_mode<synchronous>, transform_indices = @transform_2, window_bounds = array<i64: 1, 4>}, {transform_indices = @transform_3, window_bounds = array<i64: 2, 4>}]} {
    %c0_i32 = arith.constant 0 : i32
    %0 = arith.cmpi eq, %arg1, %c0_i32 : i32
    %1 = arith.extui %0 : i1 to i32
    %c0_i32_0 = arith.constant 0 : i32
    %2 = arith.cmpi ne, %1, %c0_i32_0 : i32
    scf.if %2 {
      %cst = arith.constant 0.000000e+00 : f32
      %13 = vector.broadcast %cst : f32 to vector<2x4x128xf32>
      %c0_11 = arith.constant 0 : index
      %c0_12 = arith.constant 0 : index
      %c0_13 = arith.constant 0 : index
      %14 = vector.load %arg6[%c0_11, %c0_12, %c0_13] : memref<2x4x128xf32, #tpu.memory_space<vmem>>, vector<2x4x128xf32>
      tpu.vector_store %arg6[%c0_11, %c0_12, %c0_13], %13 {strides = array<i32>} : memref<2x4x128xf32, #tpu.memory_space<vmem>>, vector<2x4x128xf32>,
    } else {
    }
    %c0 = arith.constant 0 : index
    %c0_1 = arith.constant 0 : index
    %c0_2 = arith.constant 0 : index
    %3 = vector.load %arg2[%c0, %c0_1, %c0_2] : memref<2x4x256xf32, #tpu.memory_space<vmem>>, vector<2x4x256xf32>
    %c0_3 = arith.constant 0 : index
    %c0_4 = arith.constant 0 : index
    %c0_5 = arith.constant 0 : index
    %4 = vector.load %arg6[%c0_3, %c0_4, %c0_5] : memref<2x4x128xf32, #tpu.memory_space<vmem>>, vector<2x4x128xf32>
    %5 = vector.extract_strided_slice %3 {offsets = [0, 0, 0], sizes = [2, 4, 128], strides = [1, 1, 1]} : vector<2x4x256xf32> to vector<2x4x128xf32>
    %6 = vector.extract_strided_slice %3 {offsets = [0, 0, 128], sizes = [2, 4, 128], strides = [1, 1, 1]} : vector<2x4x256xf32> to vector<2x4x128xf32>
    %7 = arith.addf %5, %6 : vector<2x4x128xf32>
    %8 = arith.addf %4, %7 : vector<2x4x128xf32>
    %c0_6 = arith.constant 0 : index
    %c0_7 = arith.constant 0 : index
    %c0_8 = arith.constant 0 : index
    %9 = vector.load %arg6[%c0_6, %c0_7, %c0_8] : memref<2x4x128xf32, #tpu.memory_space<vmem>>, vector<2x4x128xf32>
    tpu.vector_store %arg6[%c0_6, %c0_7, %c0_8], %8 {strides = array<i32>} : memref<2x4x128xf32, #tpu.memory_space<vmem>>, vector<2x4x128xf32>,
    %c0_i32_9 = arith.constant 0 : i32
    %10 = arith.cmpi eq, %arg1, %c0_i32_9 : i32
    %11 = arith.extui %10 : i1 to i32
    %c0_i32_10 = arith.constant 0 : i32
    %12 = arith.cmpi ne, %11, %c0_i32_10 : i32
    scf.if %12 {
      %c0_11 = arith.constant 0 : index
      %c0_12 = arith.constant 0 : index
      %c0_13 = arith.constant 0 : index
      %13 = vector.load %arg6[%c0_11, %c0_12, %c0_13] : memref<2x4x128xf32, #tpu.memory_space<vmem>>, vector<2x4x128xf32>
      %cst = arith.constant dense<0.000000e+00> : vector<2x4xf32>
      %14 = vector.multi_reduction <add>, %13, %cst [2] : vector<2x4x128xf32> to vector<2x4xf32>
      %cst_14 = arith.constant 3.906250e-03 : f32
      %15 = vector.broadcast %cst_14 : f32 to vector<2x4xf32>
      %16 = arith.mulf %14, %15 : vector<2x4xf32>
      %c0_15 = arith.constant 0 : index
      %c0_16 = arith.constant 0 : index
      %17 = vector.load %arg3[%c0_15, %c0_16] : memref<4x4xf32, #tpu.memory_space<vmem>>, vector<4x4xf32>
      %cst_17 = arith.constant dense<0.000000e+00> : vector<2x4xf32>
      %18 = tpu.matmul %16, %17, %cst_17 {dimension_numbers = #tpu.dot_dimension_numbers<[1], [0], [0], [1], [0, 0, 1, 1], [], []>} : vector<2x4xf32>, vector<4x4xf32>, vector<2x4xf32> -> vector<2x4xf32>
      %c0_18 = arith.constant 0 : index
      %c0_19 = arith.constant 0 : index
      %19 = vector.load %arg4[%c0_18, %c0_19] : memref<1x4xf32, #tpu.memory_space<vmem>>, vector<1x4xf32>
      %20 = vector.broadcast %19 : vector<1x4xf32> to vector<2x4xf32>
      %21 = arith.addf %18, %20 : vector<2x4xf32>
      %c0_20 = arith.constant 0 : index
      %c0_21 = arith.constant 0 : index
      %22 = vector.load %arg5[%c0_20, %c0_21] : memref<2x4xf32, #tpu.memory_space<vmem>>, vector<2x4xf32>
      tpu.vector_store %arg5[%c0_20, %c0_21], %21 {strides = array<i32>} : memref<2x4xf32, #tpu.memory_space<vmem>>, vector<2x4xf32>,
    } else {
    }
    return
  }
  func.func @transform_0(%arg0: i32, %arg1: i32) -> (i32, i32, i32) {
    %c0_i32 = arith.constant 0 : i32
    %c0_i32_0 = arith.constant 0 : i32
    return %arg0, %c0_i32, %arg1 : i32, i32, i32
  }
  func.func @transform_1(%arg0: i32, %arg1: i32) -> (i32, i32) {
    %c0_i32 = arith.constant 0 : i32
    %c0_i32_0 = arith.constant 0 : i32
    %c0_i32_1 = arith.constant 0 : i32
    return %c0_i32, %c0_i32_0 : i32, i32
  }
  func.func @transform_2(%arg0: i32, %arg1: i32) -> (i32, i32) {
    %c0_i32 = arith.constant 0 : i32
    %c0_i32_0 = arith.constant 0 : i32
    %c0_i32_1 = arith.constant 0 : i32
    return %c0_i32, %c0_i32_0 : i32, i32
  }
  func.func @transform_3(%arg0: i32, %arg1: i32) -> (i32, i32) {
    %c0_i32 = arith.constant 0 : i32
    %c0_i32_0 = arith.constant 0 : i32
    return %arg0, %c0_i32 : i32, i32
  }
}

module attributes {stable_mosaic.version = 11 : i64} {
  func.func @_pool_linear_kernel(%arg0: i32, %arg1: i32, %arg2: memref<2x4x256xf32, #tpu.memory_space<vmem>>, %arg3: memref<4x4xf32, #tpu.memory_space<vmem>>, %arg4: memref<1x4xf32, #tpu.memory_space<vmem>>, %arg5: memref<2x4xf32, #tpu.memory_space<vmem>>, %arg6: memref<2x4x128xf32, #tpu.memory_space<vmem>>) attributes {dimension_semantics = [#tpu.dimension_semantics<parallel>, #tpu.dimension_semantics<arbitrary>], iteration_bounds = array<i64: 1, 1>, scalar_prefetch = 0 : i64, scratch_operands = 1 : i64, tpu.core_type = #tpu.core_type<tc>, window_params = [{transform_indices = @transform_0, window_bounds = array<i64: 2, 4, 256>}, {pipeline_mode = #tpu.pipeline_mode<synchronous>, transform_indices = @transform_1, window_bounds = array<i64: 4, 4>}, {pipeline_mode = #tpu.pipeline_mode<synchronous>, transform_indices = @transform_2, window_bounds = array<i64: 1, 4>}, {transform_indices = @transform_3, window_bounds = array<i64: 2, 4>}]} {
    %c0_i32 = arith.constant 0 : i32
    %0 = arith.cmpi eq, %arg1, %c0_i32 : i32
    %1 = arith.extui %0 : i1 to i32
    %c0_i32_0 = arith.constant 0 : i32
    %2 = arith.cmpi ne, %1, %c0_i32_0 : i32
    scf.if %2 {
      %cst = arith.constant 0.000000e+00 : f32
      %13 = vector.broadcast %cst : f32 to vector<2x4x128xf32>
      %c0_11 = arith.constant 0 : index
      %c0_12 = arith.constant 0 : index
      %c0_13 = arith.constant 0 : index
      %14 = vector.load %arg6[%c0_11, %c0_12, %c0_13] : memref<2x4x128xf32, #tpu.memory_space<vmem>>, vector<2x4x128xf32>
      tpu.vector_store %arg6[%c0_11, %c0_12, %c0_13], %13 {strides = array<i32>} : memref<2x4x128xf32, #tpu.memory_space<vmem>>, vector<2x4x128xf32>,
    } else {
    }
    %c0 = arith.constant 0 : index
    %c0_1 = arith.constant 0 : index
    %c0_2 = arith.constant 0 : index
    %3 = vector.load %arg2[%c0, %c0_1, %c0_2] : memref<2x4x256xf32, #tpu.memory_space<vmem>>, vector<2x4x256xf32>
    %c0_3 = arith.constant 0 : index
    %c0_4 = arith.constant 0 : index
    %c0_5 = arith.constant 0 : index
    %4 = vector.load %arg6[%c0_3, %c0_4, %c0_5] : memref<2x4x128xf32, #tpu.memory_space<vmem>>, vector<2x4x128xf32>
    %5 = vector.extract_strided_slice %3 {offsets = [0, 0, 0], sizes = [2, 4, 128], strides = [1, 1, 1]} : vector<2x4x256xf32> to vector<2x4x128xf32>
    %6 = vector.extract_strided_slice %3 {offsets = [0, 0, 128], sizes = [2, 4, 128], strides = [1, 1, 1]} : vector<2x4x256xf32> to vector<2x4x128xf32>
    %7 = arith.addf %5, %6 : vector<2x4x128xf32>
    %8 = arith.addf %4, %7 : vector<2x4x128xf32>
    %c0_6 = arith.constant 0 : index
    %c0_7 = arith.constant 0 : index
    %c0_8 = arith.constant 0 : index
    %9 = vector.load %arg6[%c0_6, %c0_7, %c0_8] : memref<2x4x128xf32, #tpu.memory_space<vmem>>, vector<2x4x128xf32>
    tpu.vector_store %arg6[%c0_6, %c0_7, %c0_8], %8 {strides = array<i32>} : memref<2x4x128xf32, #tpu.memory_space<vmem>>, vector<2x4x128xf32>,
    %c0_i32_9 = arith.constant 0 : i32
    %10 = arith.cmpi eq, %arg1, %c0_i32_9 : i32
    %11 = arith.extui %10 : i1 to i32
    %c0_i32_10 = arith.constant 0 : i32
    %12 = arith.cmpi ne, %11, %c0_i32_10 : i32
    scf.if %12 {
      %c0_11 = arith.constant 0 : index
      %c0_12 = arith.constant 0 : index
      %c0_13 = arith.constant 0 : index
      %13 = vector.load %arg6[%c0_11, %c0_12, %c0_13] : memref<2x4x128xf32, #tpu.memory_space<vmem>>, vector<2x4x128xf32>
      %cst = arith.constant dense<0.000000e+00> : vector<2x4xf32>
      %14 = vector.multi_reduction <add>, %13, %cst [2] : vector<2x4x128xf32> to vector<2x4xf32>
      %cst_14 = arith.constant 3.906250e-03 : f32
      %15 = vector.broadcast %cst_14 : f32 to vector<2x4xf32>
      %16 = arith.mulf %14, %15 : vector<2x4xf32>
      %c0_15 = arith.constant 0 : index
      %c0_16 = arith.constant 0 : index
      %17 = vector.load %arg3[%c0_15, %c0_16] : memref<4x4xf32, #tpu.memory_space<vmem>>, vector<4x4xf32>
      %cst_17 = arith.constant dense<0.000000e+00> : vector<2x4xf32>
      %18 = tpu.matmul %16, %17, %cst_17 {dimension_numbers = #tpu.dot_dimension_numbers<[1], [0], [0], [1], [0, 0, 1, 1], [], []>} : vector<2x4xf32>, vector<4x4xf32>, vector<2x4xf32> -> vector<2x4xf32>
      %c0_18 = arith.constant 0 : index
      %c0_19 = arith.constant 0 : index
      %19 = vector.load %arg4[%c0_18, %c0_19] : memref<1x4xf32, #tpu.memory_space<vmem>>, vector<1x4xf32>
      %20 = vector.broadcast %19 : vector<1x4xf32> to vector<2x4xf32>
      %21 = arith.addf %18, %20 : vector<2x4xf32>
      %c0_20 = arith.constant 0 : index
      %c0_21 = arith.constant 0 : index
      %22 = vector.load %arg5[%c0_20, %c0_21] : memref<2x4xf32, #tpu.memory_space<vmem>>, vector<2x4xf32>
      tpu.vector_store %arg5[%c0_20, %c0_21], %21 {strides = array<i32>} : memref<2x4xf32, #tpu.memory_space<vmem>>, vector<2x4xf32>,
    } else {
    }
    return
  }
  func.func @transform_0(%arg0: i32, %arg1: i32) -> (i32, i32, i32) {
    %c0_i32 = arith.constant 0 : i32
    %c0_i32_0 = arith.constant 0 : i32
    return %arg0, %c0_i32, %arg1 : i32, i32, i32
  }
  func.func @transform_1(%arg0: i32, %arg1: i32) -> (i32, i32) {
    %c0_i32 = arith.constant 0 : i32
    %c0_i32_0 = arith.constant 0 : i32
    %c0_i32_1 = arith.constant 0 : i32
    return %c0_i32, %c0_i32_0 : i32, i32
  }
  func.func @transform_2(%arg0: i32, %arg1: i32) -> (i32, i32) {
    %c0_i32 = arith.constant 0 : i32
    %c0_i32_0 = arith.constant 0 : i32
    %c0_i32_1 = arith.constant 0 : i32
    return %c0_i32, %c0_i32_0 : i32, i32
  }
  func.func @transform_3(%arg0: i32, %arg1: i32) -> (i32, i32) {
    %c0_i32 = arith.constant 0 : i32
    %c0_i32_0 = arith.constant 0 : i32
    return %arg0, %c0_i32 : i32, i32
  }
}

</mosaic_0001>

<bundles_post_ra>
// kernel: tpu_custom_call.1
= control target key start
LH: loop header
LB: loop body
LE: loop exit
PB: predicated region body
PF: predicated region fallthrough
CT: control target
= control target key end

     0   :  { %8 = vsyncpa [#allocation4], 0  ;;  %s348_s0 = inlined_call_operand.hbm [shape: f32[2,4,256], index: 0, kind: input, shape index: {}]   ;;  %s349_s1 = inlined_call_operand.hbm [shape: f32[4,4], index: 1, kind: input, shape index: {}]   ;;  %s350_s2 = inlined_call_operand.vmem [shape: f32[1,4], index: 2, kind: input, shape index: {}]   ;;  %s351_s3 = inlined_call_operand.hbm [shape: f32[2,4], index: 3, kind: output, shape index: {}]  }
   0x1   :  { %9 = vsyncpa [#allocation7], 0 }
   0x2   :  { %10 = vsyncpa [#allocation5], 0  ;;  %s282_s12 = smov [#allocation3]   ;;  %s210_s16 = scalar_lea.hbm %s348_s0, 256 }
   0x3   :  { %s16_s13 = sshll.u32 %s282_s12, 4  ;;  %p211_p0 = scmp.ne.s32.totalorder %s348_s0, %s210_s16  ;;  %s17_s13 = int_to_ptr.vmem [resolvable:$true] %s16_s13 }
   0x4   :  { %p214_p1 = scmp.lt.u32.totalorder %s210_s16, %s348_s0 }
   0x6   :  { %p216_p2 = pnand %p214_p1, %p211_p0 }
   0x8   :  { %219 = shalt.err (!%p216_p2)
}
   0x9   :  { %s220_s21 = scalar_lea.vmem %s17_s13, 256  ;;  %p225_p4 = scmp.lt.s32.totalorder %s17_s13, %s17_s13 }
   0xa   :  { %p221_p3 = scmp.ne.s32.totalorder %s17_s13, %s220_s21  ;;  %p226_p5 = scmp.lt.s32.totalorder %s220_s21, %s220_s21 }
   0xc   :  { %p227_p6 = por %p226_p5, %p225_p4 }
   0xe   :  { %p228_p7 = pnand %p227_p6, %p221_p3 }
  0x10   :  { %231 = shalt.err (!%p228_p7)
}
  0x11   :  { %s283_s22 = smov 128   ;;  %s284_s23 = smov 8  }
  0x12   :  { %22 = dma.hbm_to_vmem [thread:$0]  %s348_s0, 256, %s17_s13, [#allocation4], %s283_s22, %s283_s22, %s284_s23  }
  0x13   :  { %s285_s26 = smov [#allocation6]   ;;  %s232_s30 = scalar_lea.hbm %s349_s1, 64 }
  0x14   :  { %s29_s27 = sshll.u32 %s285_s26, 4  ;;  %p233_p8 = scmp.ne.s32.totalorder %s349_s1, %s232_s30  ;;  %s30_s27 = int_to_ptr.vmem [resolvable:$true] %s29_s27 }
  0x15   :  { %p236_p9 = scmp.lt.u32.totalorder %s232_s30, %s349_s1 }
  0x17   :  { %p238_p10 = pnand %p236_p9, %p233_p8 }
  0x19   :  { %241 = shalt.err (!%p238_p10)
}
  0x1a   :  { %s242_s8 = scalar_lea.vmem %s30_s27, 64  ;;  %p247_p12 = scmp.lt.s32.totalorder %s30_s27, %s30_s27 }
  0x1b   :  { %p243_p11 = scmp.ne.s32.totalorder %s30_s27, %s242_s8  ;;  %p248_p13 = scmp.lt.s32.totalorder %s242_s8, %s242_s8 }
  0x1d   :  { %p249_p0 = por %p248_p13, %p247_p12 }
  0x1f   :  { %p250_p1 = pnand %p249_p0, %p243_p11 }
  0x21   :  { %253 = shalt.err (!%p250_p1)
}
  0x22   :  { %32 = dma.hbm_to_vmem [thread:$0]  %s349_s1, 64, %s30_s27, [#allocation7]  }
  0x23   :  { %276 = dma.done.wait [#allocation4], 256  }
  0x24   :  { %277 = vsyncadd [#allocation4], 4294967040 }
  0x25   :  { %278 = dma.done.wait [#allocation7], 64  }
  0x26   :  { %279 = vsyncadd [#allocation7], 4294967232  ;;  %v286_v0 = vmov 0.0   ;;  %v47_v1 = vld [vmem:[#allocation3] sm:$0xff]  ;;  %v48_v2 = vld [vmem:[#allocation3 + $0x8] sm:$0xff]  ;;  %vm68_vm0 = vcmask 1043456   ;;  %v87_v16 = vlaneseq }
  0x27   :  { %45 = vst [vmem:[#allocation2] sm:$0xf] %v286_v0  ;;  %46 = vst [vmem:[#allocation2 + $0x4] sm:$0xf] %v286_v0  ;;  %198 = vmatprep.subr.mxu0 %v286_v0  ;;  %v53_v3 = vrot.slane %v47_v1, 4  ;;  %v54_v4 = vrot.slane %v48_v2, 4 }
  0x28   :  { %v77_v15 = vld [vmem:[#allocation6] sm:$0xf]  ;;  %vm287_vm1 = vmmov 0   ;;  %v88_v17 = vand.u32 127, %v87_v16  ;;  %v90_v18 = vshrl.u32 %v87_v16, 7  ;;  %vm97_vm2 = vcmask 1041409  }
  0x29   :  { %v57_v7 = vadd.f32 %v53_v3, %v47_v1  ;;  %v58_v8 = vadd.f32 %v54_v4, %v48_v2  ;;  %199 = vmatpush3.msk.msra.mxu0 %vm68_vm0, %v77_v15  ;;  %200 = vmatprep.mubr.msk.f32.mxu0 %vm287_vm1, %v286_v0  ;;  %vm99_vm3 = vcmask 31744   ;;  %v193_v27 = vld [vmem:[%s350_s2] ss:$0 sm:$0xff]  ;;  %s288_s11 = smov [#allocation8]   ;;  %vm175_vm4 = vcmask 25600  }
  0x2a   :  { %v91_v20 = vsub.s32 %v88_v17, %v90_v18  ;;  %s183_s12 = sshll.u32 %s288_s11, 4  ;;  %s184_s12 = int_to_ptr.vmem [resolvable:$true] %s183_s12 }
  0x2b   :  { %s254_s13 = scalar_lea.vmem %s184_s12, 32  ;;  %p259_p3 = scmp.lt.s32.totalorder %s184_s12, %s184_s12 }
  0x2c   :  { %p255_p2 = scmp.ne.s32.totalorder %s184_s12, %s254_s13  ;;  %p260_p4 = scmp.lt.s32.totalorder %s254_s13, %s254_s13 }
  0x2e   :  { %v49_v5 = vld [vmem:[#allocation2] sm:$0xf]  ;;  %v50_v6 = vld [vmem:[#allocation2 + $0x4] sm:$0xf]  ;;  %p261_p5 = por %p260_p4, %p259_p3 }
  0x2f   :  { %v59_v9 = vadd.f32 %v57_v7, %v49_v5  ;;  %v60_v10 = vadd.f32 %v58_v8, %v50_v6 }
  0x30   :  { %p262_p6 = pnand %p261_p5, %p255_p2 }
  0x31   :  { %61 = vst [vmem:[#allocation2] sm:$0xf] %v59_v9  ;;  %62 = vst [vmem:[#allocation2 + $0x4] sm:$0xf] %v60_v10 }
  0x38   :  { %v66_v11 = vld [vmem:[#allocation2] sm:$0xf]  ;;  %v67_v12 = vld [vmem:[#allocation2 + $0x4] sm:$0xf] }
  0x39   :  { %v69_v13 = vsel %vm68_vm0, %v66_v11, 0.0  ;;  %v72_v14 = vsel %vm68_vm0, %v67_v12, 0.0 }
  0x3a   :  { %70 = vadd.xlane.f32.xlu0 %v69_v13 }
  0x3e   :  { %73 = vadd.xlane.f32.xlu0 %v72_v14 }
  0xc7   :  { %v71_v19 = vpop.xlane.xlu0 %70 }
  0xc8   :  { %v75_v21 = vmul.f32 0.00390625, %v71_v19 }
  0xca   :  { %v92_v24 = vrot.slane %v75_v21, %v91_v20 }
  0xcb   :  { %v74_v22 = vpop.xlane.xlu0 %73 }
  0xcc   :  { %v76_v23 = vmul.f32 0.00390625, %v74_v22 }
  0xce   :  { %v96_v25 = vrot.slane %v76_v23, %v91_v20 }
  0xd0   :  { %v98_v26 = vsel %vm97_vm2, %v96_v25, %v92_v24 }
  0xd1   :  { %201 = vmatmul.mubr.msk.f32.vlgmr.msra.gmra.mrb[0].mxu0 %vm99_vm3, %v98_v26 }
 0x1a4   :  { %v171_v28 = vpop.f32.mrb[0].mxu0 }
 0x1a5   :  { %v172_v29 = vadd.f32 %v193_v27, %v171_v28  ;;  %v202_v30 = vpop.f32.mrb[1].mxu0 }
 0x1a7   :  { %176 = vst.msk [vmem:[#allocation8] sm:$0x3] %vm175_vm4, %v172_v29 }
 0x1a8   :  { %265 = shalt.err (!%p262_p6)
}
 0x1a9   :  { %s266_s16 = scalar_lea.hbm %s351_s3, 32 }
 0x1aa   :  { %p267_p7 = scmp.ne.s32.totalorder %s351_s3, %s266_s16  ;;  %p270_p8 = scmp.lt.u32.totalorder %s266_s16, %s351_s3 }
 0x1ac   :  { %p272_p9 = pnand %p270_p8, %p267_p7 }
 0x1ae   :  { %275 = shalt.err (!%p272_p9)
}
 0x1af   :  { %186 = dma.vmem_to_hbm [thread:$0]  %s184_s12, 32, %s351_s3, [#allocation5]  }
 0x1b0   :  { %280 = dma.done.wait [#allocation5], 32  }
 0x1b1   :  { %281 = vsyncadd [#allocation5], 4294967264 }
 0x1b2   :  { %190 = vsyncpa [#allocation4], 1 }
 0x1b3   :  { %191 = vsyncpa [#allocation7], 1 }
 0x1b4   :  { %192 = vsyncpa [#allocation5], 1 }

// kernel: tpu_custom_call.1
= control target key start
LH: loop header
LB: loop body
LE: loop exit
PB: predicated region body
PF: predicated region fallthrough
CT: control target
= control target key end

     0   :  { %8 = vsyncpa [#allocation4], 0  ;;  %s348_s0 = inlined_call_operand.hbm [shape: f32[2,4,256], index: 0, kind: input, shape index: {}]   ;;  %s349_s1 = inlined_call_operand.hbm [shape: f32[4,4], index: 1, kind: input, shape index: {}]   ;;  %s350_s2 = inlined_call_operand.vmem [shape: f32[1,4], index: 2, kind: input, shape index: {}]   ;;  %s351_s3 = inlined_call_operand.hbm [shape: f32[2,4], index: 3, kind: output, shape index: {}]  }
   0x1   :  { %9 = vsyncpa [#allocation7], 0 }
   0x2   :  { %10 = vsyncpa [#allocation5], 0  ;;  %s282_s12 = smov [#allocation3]   ;;  %s210_s16 = scalar_lea.hbm %s348_s0, 256 }
   0x3   :  { %s16_s13 = sshll.u32 %s282_s12, 4  ;;  %p211_p0 = scmp.ne.s32.totalorder %s348_s0, %s210_s16  ;;  %s17_s13 = int_to_ptr.vmem [resolvable:$true] %s16_s13 }
   0x4   :  { %p214_p1 = scmp.lt.u32.totalorder %s210_s16, %s348_s0 }
   0x6   :  { %p216_p2 = pnand %p214_p1, %p211_p0 }
   0x8   :  { %219 = shalt.err (!%p216_p2)
}
   0x9   :  { %s220_s21 = scalar_lea.vmem %s17_s13, 256  ;;  %p225_p4 = scmp.lt.s32.totalorder %s17_s13, %s17_s13 }
   0xa   :  { %p221_p3 = scmp.ne.s32.totalorder %s17_s13, %s220_s21  ;;  %p226_p5 = scmp.lt.s32.totalorder %s220_s21, %s220_s21 }
   0xc   :  { %p227_p6 = por %p226_p5, %p225_p4 }
   0xe   :  { %p228_p7 = pnand %p227_p6, %p221_p3 }
  0x10   :  { %231 = shalt.err (!%p228_p7)
}
  0x11   :  { %s283_s22 = smov 128   ;;  %s284_s23 = smov 8  }
  0x12   :  { %22 = dma.hbm_to_vmem [thread:$0]  %s348_s0, 256, %s17_s13, [#allocation4], %s283_s22, %s283_s22, %s284_s23  }
  0x13   :  { %s285_s26 = smov [#allocation6]   ;;  %s232_s30 = scalar_lea.hbm %s349_s1, 64 }
  0x14   :  { %s29_s27 = sshll.u32 %s285_s26, 4  ;;  %p233_p8 = scmp.ne.s32.totalorder %s349_s1, %s232_s30  ;;  %s30_s27 = int_to_ptr.vmem [resolvable:$true] %s29_s27 }
  0x15   :  { %p236_p9 = scmp.lt.u32.totalorder %s232_s30, %s349_s1 }
  0x17   :  { %p238_p10 = pnand %p236_p9, %p233_p8 }
  0x19   :  { %241 = shalt.err (!%p238_p10)
}
  0x1a   :  { %s242_s8 = scalar_lea.vmem %s30_s27, 64  ;;  %p247_p12 = scmp.lt.s32.totalorder %s30_s27, %s30_s27 }
  0x1b   :  { %p243_p11 = scmp.ne.s32.totalorder %s30_s27, %s242_s8  ;;  %p248_p13 = scmp.lt.s32.totalorder %s242_s8, %s242_s8 }
  0x1d   :  { %p249_p0 = por %p248_p13, %p247_p12 }
  0x1f   :  { %p250_p1 = pnand %p249_p0, %p243_p11 }
  0x21   :  { %253 = shalt.err (!%p250_p1)
}
  0x22   :  { %32 = dma.hbm_to_vmem [thread:$0]  %s349_s1, 64, %s30_s27, [#allocation7]  }
  0x23   :  { %276 = dma.done.wait [#allocation4], 256  }
  0x24   :  { %277 = vsyncadd [#allocation4], 4294967040 }
  0x25   :  { %278 = dma.done.wait [#allocation7], 64  }
  0x26   :  { %279 = vsyncadd [#allocation7], 4294967232  ;;  %v286_v0 = vmov 0.0   ;;  %v47_v1 = vld [vmem:[#allocation3] sm:$0xff]  ;;  %v48_v2 = vld [vmem:[#allocation3 + $0x8] sm:$0xff]  ;;  %vm68_vm0 = vcmask 1043456   ;;  %v87_v16 = vlaneseq }
  0x27   :  { %45 = vst [vmem:[#allocation2] sm:$0xf] %v286_v0  ;;  %46 = vst [vmem:[#allocation2 + $0x4] sm:$0xf] %v286_v0  ;;  %198 = vmatprep.subr.mxu0 %v286_v0  ;;  %v53_v3 = vrot.slane %v47_v1, 4  ;;  %v54_v4 = vrot.slane %v48_v2, 4 }
  0x28   :  { %v77_v15 = vld [vmem:[#allocation6] sm:$0xf]  ;;  %vm287_vm1 = vmmov 0   ;;  %v88_v17 = vand.u32 127, %v87_v16  ;;  %v90_v18 = vshrl.u32 %v87_v16, 7  ;;  %vm97_vm2 = vcmask 1041409  }
  0x29   :  { %v57_v7 = vadd.f32 %v53_v3, %v47_v1  ;;  %v58_v8 = vadd.f32 %v54_v4, %v48_v2  ;;  %199 = vmatpush3.msk.msra.mxu0 %vm68_vm0, %v77_v15  ;;  %200 = vmatprep.mubr.msk.f32.mxu0 %vm287_vm1, %v286_v0  ;;  %vm99_vm3 = vcmask 31744   ;;  %v193_v27 = vld [vmem:[%s350_s2] ss:$0 sm:$0xff]  ;;  %s288_s11 = smov [#allocation8]   ;;  %vm175_vm4 = vcmask 25600  }
  0x2a   :  { %v91_v20 = vsub.s32 %v88_v17, %v90_v18  ;;  %s183_s12 = sshll.u32 %s288_s11, 4  ;;  %s184_s12 = int_to_ptr.vmem [resolvable:$true] %s183_s12 }
  0x2b   :  { %s254_s13 = scalar_lea.vmem %s184_s12, 32  ;;  %p259_p3 = scmp.lt.s32.totalorder %s184_s12, %s184_s12 }
  0x2c   :  { %p255_p2 = scmp.ne.s32.totalorder %s184_s12, %s254_s13  ;;  %p260_p4 = scmp.lt.s32.totalorder %s254_s13, %s254_s13 }
  0x2e   :  { %v49_v5 = vld [vmem:[#allocation2] sm:$0xf]  ;;  %v50_v6 = vld [vmem:[#allocation2 + $0x4] sm:$0xf]  ;;  %p261_p5 = por %p260_p4, %p259_p3 }
  0x2f   :  { %v59_v9 = vadd.f32 %v57_v7, %v49_v5  ;;  %v60_v10 = vadd.f32 %v58_v8, %v50_v6 }
  0x30   :  { %p262_p6 = pnand %p261_p5, %p255_p2 }
  0x31   :  { %61 = vst [vmem:[#allocation2] sm:$0xf] %v59_v9  ;;  %62 = vst [vmem:[#allocation2 + $0x4] sm:$0xf] %v60_v10 }
  0x38   :  { %v66_v11 = vld [vmem:[#allocation2] sm:$0xf]  ;;  %v67_v12 = vld [vmem:[#allocation2 + $0x4] sm:$0xf] }
  0x39   :  { %v69_v13 = vsel %vm68_vm0, %v66_v11, 0.0  ;;  %v72_v14 = vsel %vm68_vm0, %v67_v12, 0.0 }
  0x3a   :  { %70 = vadd.xlane.f32.xlu0 %v69_v13 }
  0x3e   :  { %73 = vadd.xlane.f32.xlu0 %v72_v14 }
  0xc7   :  { %v71_v19 = vpop.xlane.xlu0 %70 }
  0xc8   :  { %v75_v21 = vmul.f32 0.00390625, %v71_v19 }
  0xca   :  { %v92_v24 = vrot.slane %v75_v21, %v91_v20 }
  0xcb   :  { %v74_v22 = vpop.xlane.xlu0 %73 }
  0xcc   :  { %v76_v23 = vmul.f32 0.00390625, %v74_v22 }
  0xce   :  { %v96_v25 = vrot.slane %v76_v23, %v91_v20 }
  0xd0   :  { %v98_v26 = vsel %vm97_vm2, %v96_v25, %v92_v24 }
  0xd1   :  { %201 = vmatmul.mubr.msk.f32.vlgmr.msra.gmra.mrb[0].mxu0 %vm99_vm3, %v98_v26 }
 0x1a4   :  { %v171_v28 = vpop.f32.mrb[0].mxu0 }
 0x1a5   :  { %v172_v29 = vadd.f32 %v193_v27, %v171_v28  ;;  %v202_v30 = vpop.f32.mrb[1].mxu0 }
 0x1a7   :  { %176 = vst.msk [vmem:[#allocation8] sm:$0x3] %vm175_vm4, %v172_v29 }
 0x1a8   :  { %265 = shalt.err (!%p262_p6)
}
 0x1a9   :  { %s266_s16 = scalar_lea.hbm %s351_s3, 32 }
 0x1aa   :  { %p267_p7 = scmp.ne.s32.totalorder %s351_s3, %s266_s16  ;;  %p270_p8 = scmp.lt.u32.totalorder %s266_s16, %s351_s3 }
 0x1ac   :  { %p272_p9 = pnand %p270_p8, %p267_p7 }
 0x1ae   :  { %275 = shalt.err (!%p272_p9)
}
 0x1af   :  { %186 = dma.vmem_to_hbm [thread:$0]  %s184_s12, 32, %s351_s3, [#allocation5]  }
 0x1b0   :  { %280 = dma.done.wait [#allocation5], 32  }
 0x1b1   :  { %281 = vsyncadd [#allocation5], 4294967264 }
 0x1b2   :  { %190 = vsyncpa [#allocation4], 1 }
 0x1b3   :  { %191 = vsyncpa [#allocation7], 1 }
 0x1b4   :  { %192 = vsyncpa [#allocation5], 1 }

</bundles_post_ra>
